<compile_context>
chip_gen: v7x
topology: tpu7x:2x2x1
jax: 0.10.0
libtpu: 0.0.40
codegen_flags: <defaults>
</compile_context>

<pallas_src>
import jax
import jax.numpy as jnp
from jax.experimental import pallas as pl
from jax.experimental.pallas import tpu as pltpu


def _round_up(v: int, m: int) -> int:
    return ((v + m - 1) // m) * m


# --------------------------------------------------------------------------- #
# Kernel
# --------------------------------------------------------------------------- #
def _make_fused_mlp_kernel(num_layers, bias_offsets, weight_dtype):
    """Whole-MLP kernel on VMEM-resident weights and an M tile of activations.

    Ref order: x_tile, w_0..w_{L-1}, bias_cat, out_tile.
    """
    cast_lhs = jnp.dtype(weight_dtype) != jnp.dtype(jnp.float32)

    def kernel(x_ref, *refs):
        w_refs = refs[:num_layers]
        b_ref = refs[num_layers]            # (1, sum(Np)) f32, static slices below
        o_ref = refs[num_layers + 1]

        h = x_ref[...]                      # f32 activations; VPU work stays f32
        for i in range(num_layers):
            rhs = w_refs[i][...]            # stored dtype (f32 or bf16) -> MXU directly
            lhs = h.astype(weight_dtype) if cast_lhs else h  # downcast only at MXU edge
            h = jnp.dot(lhs, rhs, preferred_element_type=jnp.float32)
            h = h + b_ref[:, bias_offsets[i]:bias_offsets[i + 1]]  # (1,Np) broadcast
            if i != num_layers - 1:
                h = jnp.maximum(h, 0.0)
        o_ref[...] = h.astype(o_ref.dtype)

    return kernel


# --------------------------------------------------------------------------- #
# One-time parameter preparation (hoisted out of the per-call forward)
# --------------------------------------------------------------------------- #
def prepare_mlp_params(torch_style_params, input_dim, *, lane_align=128,
                       weight_dtype=jnp.float32):
    """Transpose PyTorch (out,in) weights to (in,out), zero-pad every feature dim
    to a lane multiple, optionally cast weights to bf16 (halved weight DMA /
    VMEM), and concatenate all biases into a single lane-dense row.

    lane_align: 128 fits the v5e 128x128 MXU; use 256 on v6e/v7x to fill the
    256x256 MXU (kept at 128 for the tiny demo shapes).
    """
    dims = [input_dim] + [w.shape[0] for (w, _) in torch_style_params]
    dims_p = [_round_up(d, lane_align) for d in dims]

    weights, bias_chunks = [], []
    for i, (w, b) in enumerate(torch_style_params):
        kp, np_ = dims_p[i], dims_p[i + 1]
        wt = w.T                                               # (in, out)
        wp = jnp.zeros((kp, np_), jnp.float32).at[:wt.shape[0], :wt.shape[1]].set(wt)
        weights.append(wp.astype(weight_dtype))
        bp = jnp.zeros((1, np_), jnp.float32).at[:, :b.shape[-1]].set(b.reshape(1, -1))
        bias_chunks.append(bp)

    bias_cat = jnp.concatenate(bias_chunks, axis=1)            # (1, sum(Np)) f32
    bias_offsets = [0]
    for np_ in dims_p[1:]:
        bias_offsets.append(bias_offsets[-1] + np_)

    return dict(weights=weights, bias_cat=bias_cat, dims=dims, dims_p=dims_p,
                bias_offsets=tuple(bias_offsets), weight_dtype=jnp.dtype(weight_dtype))


# --------------------------------------------------------------------------- #
# Forward builder
# --------------------------------------------------------------------------- #
def make_mlp_forward(prepared, *, tile_m=256, single_buffer_resident=True):
    weights = prepared["weights"]
    bias_cat = prepared["bias_cat"]
    dims, dims_p = prepared["dims"], prepared["dims_p"]
    bias_offsets = prepared["bias_offsets"]
    weight_dtype = prepared["weight_dtype"]
    num_layers = len(weights)
    k0, k0p = dims[0], dims_p[0]
    n_out, n_outp = dims[-1], dims_p[-1]

    resident_bytes = (sum(int(w.size) * w.dtype.itemsize for w in weights)
                      + int(bias_cat.size) * 4)
    # TODO(synk): when resident_bytes exceeds roughly half of VMEM (~32 MiB on
    # v7x, ~64 MiB on v5e/v6e), switch to a per-layer (M,N,K)-tiled matmul with
    # a VMEM f32 accumulator and a pl.when(k == last) bias+ReLU epilogue instead
    # of this weight-resident fusion.
    if resident_bytes > 48 * 1024 * 1024:
        raise NotImplementedError("weights too large for weight-resident fused MLP")

    resident_mode = {}
    if single_buffer_resident:
        # Weight/bias blocks never change across the M grid -> single-buffer them
        # to halve their VMEM footprint (matters on v7x's 64 MiB VMEM).
        resident_mode = dict(pipeline_mode=pl.Buffered(buffer_count=1))

    kernel = _make_fused_mlp_kernel(num_layers, bias_offsets, weight_dtype)

    def forward(x):
        m = x.shape[0]
        tm = min(tile_m, _round_up(m, 8))          # sublane-aligned M tile
        mp = _round_up(m, tm)

        x_p = x
        if (mp, k0p) != x.shape:                   # pad activations lane/sublane-dense
            x_p = jnp.zeros((mp, k0p), x.dtype).at[:m, :k0].set(x)

        grid = (mp // tm,)
        in_specs = [pl.BlockSpec((tm, k0p), lambda i: (i, 0))]
        for li in range(num_layers):
            kp, np_ = dims_p[li], dims_p[li + 1]
            in_specs.append(pl.BlockSpec((kp, np_), lambda i: (0, 0), **resident_mode))
        in_specs.append(pl.BlockSpec(bias_cat.shape, lambda i: (0, 0), **resident_mode))
        out_spec = pl.BlockSpec((tm, n_outp), lambda i: (i, 0))

        # Advisory cost estimate for XLA's scheduler.
        itemsize = jnp.dtype(x.dtype).itemsize
        flops = sum(2 * mp * dims_p[i] * dims_p[i + 1] for i in range(num_layers))
        bytes_accessed = mp * k0p * itemsize + resident_bytes + mp * n_outp * itemsize

        # Derive VMEM budget from the actual footprint (resident operands, the
        # double-buffered x/out tiles, and intermediate activations) + slack.
        resident_vmem = resident_bytes * (1 if single_buffer_resident else 2)
        stream_vmem = 2 * (tm * k0p + tm * n_outp) * 4
        inter_vmem = 2 * tm * max(dims_p) * 4
        vmem_limit = int(min(max(resident_vmem + stream_vmem + inter_vmem + (4 << 20),
                                 16 << 20), 100 << 20))

        out_p = pl.pallas_call(
            kernel,
            out_shape=jax.ShapeDtypeStruct((mp, n_outp), x.dtype),
            grid=grid,
            in_specs=in_specs,
            out_specs=out_spec,
            cost_estimate=pl.CostEstimate(
                flops=flops, transcendentals=0, bytes_accessed=bytes_accessed),
            compiler_params=pltpu.CompilerParams(
                dimension_semantics=("parallel",),   # 2x on v7x, no-op on v5e/v6e
                vmem_limit_bytes=vmem_limit,
            ),
        )(x_p, *weights, bias_cat)

        return out_p[:m, :n_out]                   # strip zero padding (glue)

    return forward


# --------------------------------------------------------------------------- #
# Init / reference (PyTorch-equivalent semantics)
# --------------------------------------------------------------------------- #
def init_mlp_params(key, input_dim, hidden_dims, output_dim):
    """PyTorch nn.Linear-style params: weight (out, in), bias (out,)."""
    dims = [input_dim] + list(hidden_dims) + [output_dim]
    params = []
    for i in range(len(dims) - 1):
        fan_in, fan_out = dims[i], dims[i + 1]
        key, wk, bk = jax.random.split(key, 3)
        bound = 1.0 / (fan_in ** 0.5)
        w = jax.random.uniform(wk, (fan_out, fan_in), jnp.float32, -bound, bound)
        b = jax.random.uniform(bk, (fan_out,), jnp.float32, -bound, bound)
        params.append((w, b))
    return params


def mlp_reference(params, x):
    """Pure-JAX reference: x @ W.T + b, ReLU between layers."""
    n = len(params)
    for i, (w, b) in enumerate(params):
        x = x @ w.T + b
        if i != n - 1:
            x = jnp.maximum(x, 0.0)
    return x


# --------------------------------------------------------------------------- #
# Demo / correctness check
# --------------------------------------------------------------------------- #
if __name__ == "__main__":
    key = jax.random.PRNGKey(0)

    batch = 8
    input_dim = 32
    hidden_dims = [64, 64]
    output_dim = 16

    key, pk, xk = jax.random.split(key, 3)
    torch_params = init_mlp_params(pk, input_dim, hidden_dims, output_dim)
    x = jax.random.normal(xk, (batch, input_dim), jnp.float32)

    ref = mlp_reference(torch_params, x)

    # f32 path (tight check). Parameter padding/transpose done ONCE here.
    prep_f32 = prepare_mlp_params(torch_params, input_dim, weight_dtype=jnp.float32)
    try:
        fwd = jax.jit(make_mlp_forward(prep_f32, single_buffer_resident=True))
        out = jax.block_until_ready(fwd(x))
        single_buffer_ok = True
    except Exception:
        # pipeline_mode=pl.Buffered(1) unsupported on this jax build; fall back
        # to default double-buffered resident operands (correctness unchanged).
        single_buffer_ok = False
        fwd = jax.jit(make_mlp_forward(prep_f32, single_buffer_resident=False))
        out = jax.block_until_ready(fwd(x))

    assert out.shape == (batch, output_dim)
    assert jnp.allclose(out, ref, atol=1e-4, rtol=1e-4)

    # bf16-weight path (halved weight DMA, bf16 MXU; f32 accumulation) — looser
    # tolerance since activations are downcast at each MXU boundary.
    prep_bf16 = prepare_mlp_params(torch_params, input_dim, weight_dtype=jnp.bfloat16)
    fwd_bf16 = jax.jit(
        make_mlp_forward(prep_bf16, single_buffer_resident=single_buffer_ok))
    out_bf16 = jax.block_until_ready(fwd_bf16(x))
    assert out_bf16.shape == (batch, output_dim)
    assert jnp.allclose(out_bf16, ref, atol=5e-2, rtol=5e-2)

    print("KERNEL_OK")
</pallas_src>

<mosaic_0001>
module attributes {stable_mosaic.version = 11 : i64} {
  func.func @kernel(%arg0: i32, %arg1: memref<8x128xf32, #tpu.memory_space<vmem>>, %arg2: memref<128x128xf32, #tpu.memory_space<vmem>>, %arg3: memref<128x128xf32, #tpu.memory_space<vmem>>, %arg4: memref<128x128xf32, #tpu.memory_space<vmem>>, %arg5: memref<1x384xf32, #tpu.memory_space<vmem>>, %arg6: memref<8x128xf32, #tpu.memory_space<vmem>>) attributes {dimension_semantics = [#tpu.dimension_semantics<parallel>], iteration_bounds = array<i64: 1>, scalar_prefetch = 0 : i64, scratch_operands = 0 : i64, tpu.core_type = #tpu.core_type<tc>, window_params = [{transform_indices = @transform_0, window_bounds = array<i64: 8, 128>}, {pipeline_mode = #tpu.pipeline_mode<synchronous>, transform_indices = @transform_1, window_bounds = array<i64: 128, 128>}, {pipeline_mode = #tpu.pipeline_mode<synchronous>, transform_indices = @transform_2, window_bounds = array<i64: 128, 128>}, {pipeline_mode = #tpu.pipeline_mode<synchronous>, transform_indices = @transform_3, window_bounds = array<i64: 128, 128>}, {pipeline_mode = #tpu.pipeline_mode<synchronous>, transform_indices = @transform_4, window_bounds = array<i64: 1, 384>}, {transform_indices = @transform_5, window_bounds = array<i64: 8, 128>}]} {
    %c0 = arith.constant 0 : index
    %c0_0 = arith.constant 0 : index
    %0 = vector.load %arg1[%c0, %c0_0] : memref<8x128xf32, #tpu.memory_space<vmem>>, vector<8x128xf32>
    %c0_1 = arith.constant 0 : index
    %c0_2 = arith.constant 0 : index
    %1 = vector.load %arg2[%c0_1, %c0_2] : memref<128x128xf32, #tpu.memory_space<vmem>>, vector<128x128xf32>
    %cst = arith.constant dense<0.000000e+00> : vector<8x128xf32>
    %2 = tpu.matmul %0, %1, %cst {dimension_numbers = #tpu.dot_dimension_numbers<[1], [0], [0], [1], [0, 0, 1, 1], [], []>} : vector<8x128xf32>, vector<128x128xf32>, vector<8x128xf32> -> vector<8x128xf32>
    %c0_3 = arith.constant 0 : index
    %c0_4 = arith.constant 0 : index
    %3 = vector.load %arg5[%c0_3, %c0_4] : memref<1x384xf32, #tpu.memory_space<vmem>>, vector<1x128xf32>
    %4 = vector.broadcast %3 : vector<1x128xf32> to vector<8x128xf32>
    %5 = arith.addf %2, %4 : vector<8x128xf32>
    %cst_5 = arith.constant 0.000000e+00 : f32
    %6 = vector.broadcast %cst_5 : f32 to vector<8x128xf32>
    %7 = arith.maximumf %5, %6 : vector<8x128xf32>
    %c0_6 = arith.constant 0 : index
    %c0_7 = arith.constant 0 : index
    %8 = vector.load %arg3[%c0_6, %c0_7] : memref<128x128xf32, #tpu.memory_space<vmem>>, vector<128x128xf32>
    %cst_8 = arith.constant dense<0.000000e+00> : vector<8x128xf32>
    %9 = tpu.matmul %7, %8, %cst_8 {dimension_numbers = #tpu.dot_dimension_numbers<[1], [0], [0], [1], [0, 0, 1, 1], [], []>} : vector<8x128xf32>, vector<128x128xf32>, vector<8x128xf32> -> vector<8x128xf32>
    %c0_9 = arith.constant 0 : index
    %c128 = arith.constant 128 : index
    %10 = vector.load %arg5[%c0_9, %c128] : memref<1x384xf32, #tpu.memory_space<vmem>>, vector<1x128xf32>
    %11 = vector.broadcast %10 : vector<1x128xf32> to vector<8x128xf32>
    %12 = arith.addf %9, %11 : vector<8x128xf32>
    %cst_10 = arith.constant 0.000000e+00 : f32
    %13 = vector.broadcast %cst_10 : f32 to vector<8x128xf32>
    %14 = arith.maximumf %12, %13 : vector<8x128xf32>
    %c0_11 = arith.constant 0 : index
    %c0_12 = arith.constant 0 : index
    %15 = vector.load %arg4[%c0_11, %c0_12] : memref<128x128xf32, #tpu.memory_space<vmem>>, vector<128x128xf32>
    %cst_13 = arith.constant dense<0.000000e+00> : vector<8x128xf32>
    %16 = tpu.matmul %14, %15, %cst_13 {dimension_numbers = #tpu.dot_dimension_numbers<[1], [0], [0], [1], [0, 0, 1, 1], [], []>} : vector<8x128xf32>, vector<128x128xf32>, vector<8x128xf32> -> vector<8x128xf32>
    %c0_14 = arith.constant 0 : index
    %c256 = arith.constant 256 : index
    %17 = vector.load %arg5[%c0_14, %c256] : memref<1x384xf32, #tpu.memory_space<vmem>>, vector<1x128xf32>
    %18 = vector.broadcast %17 : vector<1x128xf32> to vector<8x128xf32>
    %19 = arith.addf %16, %18 : vector<8x128xf32>
    %c0_15 = arith.constant 0 : index
    %c0_16 = arith.constant 0 : index
    %20 = vector.load %arg6[%c0_15, %c0_16] : memref<8x128xf32, #tpu.memory_space<vmem>>, vector<8x128xf32>
    tpu.vector_store %arg6[%c0_15, %c0_16], %19 {strides = array<i32>} : memref<8x128xf32, #tpu.memory_space<vmem>>, vector<8x128xf32>,
    return
  }
  func.func @transform_0(%arg0: i32) -> (i32, i32) {
    %c0_i32 = arith.constant 0 : i32
    %c0_i32_0 = arith.constant 0 : i32
    return %arg0, %c0_i32 : i32, i32
  }
  func.func @transform_1(%arg0: i32) -> (i32, i32) {
    %c0_i32 = arith.constant 0 : i32
    %c0_i32_0 = arith.constant 0 : i32
    %c0_i32_1 = arith.constant 0 : i32
    return %c0_i32, %c0_i32_0 : i32, i32
  }
  func.func @transform_2(%arg0: i32) -> (i32, i32) {
    %c0_i32 = arith.constant 0 : i32
    %c0_i32_0 = arith.constant 0 : i32
    %c0_i32_1 = arith.constant 0 : i32
    return %c0_i32, %c0_i32_0 : i32, i32
  }
  func.func @transform_3(%arg0: i32) -> (i32, i32) {
    %c0_i32 = arith.constant 0 : i32
    %c0_i32_0 = arith.constant 0 : i32
    %c0_i32_1 = arith.constant 0 : i32
    return %c0_i32, %c0_i32_0 : i32, i32
  }
  func.func @transform_4(%arg0: i32) -> (i32, i32) {
    %c0_i32 = arith.constant 0 : i32
    %c0_i32_0 = arith.constant 0 : i32
    %c0_i32_1 = arith.constant 0 : i32
    return %c0_i32, %c0_i32_0 : i32, i32
  }
  func.func @transform_5(%arg0: i32) -> (i32, i32) {
    %c0_i32 = arith.constant 0 : i32
    %c0_i32_0 = arith.constant 0 : i32
    return %arg0, %c0_i32 : i32, i32
  }
}

module attributes {stable_mosaic.version = 11 : i64} {
  func.func @kernel(%arg0: i32, %arg1: memref<8x128xf32, #tpu.memory_space<vmem>>, %arg2: memref<128x128xf32, #tpu.memory_space<vmem>>, %arg3: memref<128x128xf32, #tpu.memory_space<vmem>>, %arg4: memref<128x128xf32, #tpu.memory_space<vmem>>, %arg5: memref<1x384xf32, #tpu.memory_space<vmem>>, %arg6: memref<8x128xf32, #tpu.memory_space<vmem>>) attributes {dimension_semantics = [#tpu.dimension_semantics<parallel>], iteration_bounds = array<i64: 1>, scalar_prefetch = 0 : i64, scratch_operands = 0 : i64, tpu.core_type = #tpu.core_type<tc>, window_params = [{transform_indices = @transform_0, window_bounds = array<i64: 8, 128>}, {pipeline_mode = #tpu.pipeline_mode<synchronous>, transform_indices = @transform_1, window_bounds = array<i64: 128, 128>}, {pipeline_mode = #tpu.pipeline_mode<synchronous>, transform_indices = @transform_2, window_bounds = array<i64: 128, 128>}, {pipeline_mode = #tpu.pipeline_mode<synchronous>, transform_indices = @transform_3, window_bounds = array<i64: 128, 128>}, {pipeline_mode = #tpu.pipeline_mode<synchronous>, transform_indices = @transform_4, window_bounds = array<i64: 1, 384>}, {transform_indices = @transform_5, window_bounds = array<i64: 8, 128>}]} {
    %c0 = arith.constant 0 : index
    %c0_0 = arith.constant 0 : index
    %0 = vector.load %arg1[%c0, %c0_0] : memref<8x128xf32, #tpu.memory_space<vmem>>, vector<8x128xf32>
    %c0_1 = arith.constant 0 : index
    %c0_2 = arith.constant 0 : index
    %1 = vector.load %arg2[%c0_1, %c0_2] : memref<128x128xf32, #tpu.memory_space<vmem>>, vector<128x128xf32>
    %cst = arith.constant dense<0.000000e+00> : vector<8x128xf32>
    %2 = tpu.matmul %0, %1, %cst {dimension_numbers = #tpu.dot_dimension_numbers<[1], [0], [0], [1], [0, 0, 1, 1], [], []>} : vector<8x128xf32>, vector<128x128xf32>, vector<8x128xf32> -> vector<8x128xf32>
    %c0_3 = arith.constant 0 : index
    %c0_4 = arith.constant 0 : index
    %3 = vector.load %arg5[%c0_3, %c0_4] : memref<1x384xf32, #tpu.memory_space<vmem>>, vector<1x128xf32>
    %4 = vector.broadcast %3 : vector<1x128xf32> to vector<8x128xf32>
    %5 = arith.addf %2, %4 : vector<8x128xf32>
    %cst_5 = arith.constant 0.000000e+00 : f32
    %6 = vector.broadcast %cst_5 : f32 to vector<8x128xf32>
    %7 = arith.maximumf %5, %6 : vector<8x128xf32>
    %c0_6 = arith.constant 0 : index
    %c0_7 = arith.constant 0 : index
    %8 = vector.load %arg3[%c0_6, %c0_7] : memref<128x128xf32, #tpu.memory_space<vmem>>, vector<128x128xf32>
    %cst_8 = arith.constant dense<0.000000e+00> : vector<8x128xf32>
    %9 = tpu.matmul %7, %8, %cst_8 {dimension_numbers = #tpu.dot_dimension_numbers<[1], [0], [0], [1], [0, 0, 1, 1], [], []>} : vector<8x128xf32>, vector<128x128xf32>, vector<8x128xf32> -> vector<8x128xf32>
    %c0_9 = arith.constant 0 : index
    %c128 = arith.constant 128 : index
    %10 = vector.load %arg5[%c0_9, %c128] : memref<1x384xf32, #tpu.memory_space<vmem>>, vector<1x128xf32>
    %11 = vector.broadcast %10 : vector<1x128xf32> to vector<8x128xf32>
    %12 = arith.addf %9, %11 : vector<8x128xf32>
    %cst_10 = arith.constant 0.000000e+00 : f32
    %13 = vector.broadcast %cst_10 : f32 to vector<8x128xf32>
    %14 = arith.maximumf %12, %13 : vector<8x128xf32>
    %c0_11 = arith.constant 0 : index
    %c0_12 = arith.constant 0 : index
    %15 = vector.load %arg4[%c0_11, %c0_12] : memref<128x128xf32, #tpu.memory_space<vmem>>, vector<128x128xf32>
    %cst_13 = arith.constant dense<0.000000e+00> : vector<8x128xf32>
    %16 = tpu.matmul %14, %15, %cst_13 {dimension_numbers = #tpu.dot_dimension_numbers<[1], [0], [0], [1], [0, 0, 1, 1], [], []>} : vector<8x128xf32>, vector<128x128xf32>, vector<8x128xf32> -> vector<8x128xf32>
    %c0_14 = arith.constant 0 : index
    %c256 = arith.constant 256 : index
    %17 = vector.load %arg5[%c0_14, %c256] : memref<1x384xf32, #tpu.memory_space<vmem>>, vector<1x128xf32>
    %18 = vector.broadcast %17 : vector<1x128xf32> to vector<8x128xf32>
    %19 = arith.addf %16, %18 : vector<8x128xf32>
    %c0_15 = arith.constant 0 : index
    %c0_16 = arith.constant 0 : index
    %20 = vector.load %arg6[%c0_15, %c0_16] : memref<8x128xf32, #tpu.memory_space<vmem>>, vector<8x128xf32>
    tpu.vector_store %arg6[%c0_15, %c0_16], %19 {strides = array<i32>} : memref<8x128xf32, #tpu.memory_space<vmem>>, vector<8x128xf32>,
    return
  }
  func.func @transform_0(%arg0: i32) -> (i32, i32) {
    %c0_i32 = arith.constant 0 : i32
    %c0_i32_0 = arith.constant 0 : i32
    return %arg0, %c0_i32 : i32, i32
  }
  func.func @transform_1(%arg0: i32) -> (i32, i32) {
    %c0_i32 = arith.constant 0 : i32
    %c0_i32_0 = arith.constant 0 : i32
    %c0_i32_1 = arith.constant 0 : i32
    return %c0_i32, %c0_i32_0 : i32, i32
  }
  func.func @transform_2(%arg0: i32) -> (i32, i32) {
    %c0_i32 = arith.constant 0 : i32
    %c0_i32_0 = arith.constant 0 : i32
    %c0_i32_1 = arith.constant 0 : i32
    return %c0_i32, %c0_i32_0 : i32, i32
  }
  func.func @transform_3(%arg0: i32) -> (i32, i32) {
    %c0_i32 = arith.constant 0 : i32
    %c0_i32_0 = arith.constant 0 : i32
    %c0_i32_1 = arith.constant 0 : i32
    return %c0_i32, %c0_i32_0 : i32, i32
  }
  func.func @transform_4(%arg0: i32) -> (i32, i32) {
    %c0_i32 = arith.constant 0 : i32
    %c0_i32_0 = arith.constant 0 : i32
    %c0_i32_1 = arith.constant 0 : i32
    return %c0_i32, %c0_i32_0 : i32, i32
  }
  func.func @transform_5(%arg0: i32) -> (i32, i32) {
    %c0_i32 = arith.constant 0 : i32
    %c0_i32_0 = arith.constant 0 : i32
    return %arg0, %c0_i32 : i32, i32
  }
}

</mosaic_0001>

<bundles_post_ra>
// kernel: forward.1
= control target key start
LH: loop header
LB: loop body
LE: loop exit
PB: predicated region body
PF: predicated region fallthrough
CT: control target
= control target key end

     0   :  { %10 = vsyncpa [#allocation3], 0  ;;  %s840_s0 = inlined_call_operand.vmem [shape: f32[8,128], index: 0, kind: input, shape index: {}]   ;;  %s841_s1 = inlined_call_operand.hbm [shape: f32[128,128], index: 1, kind: input, shape index: {}]   ;;  %s842_s2 = inlined_call_operand.hbm [shape: f32[128,128], index: 2, kind: input, shape index: {}]   ;;  %s843_s3 = inlined_call_operand.hbm [shape: f32[128,128], index: 3, kind: input, shape index: {}]   ;;  %s844_s4 = inlined_call_operand.vmem [shape: f32[1,384], index: 4, kind: input, shape index: {}]   ;;  %s845_s5 = inlined_call_operand.hbm [shape: f32[8,128], index: 5, kind: output, shape index: {}]  }
   0x1   :  { %11 = vsyncpa [#allocation6], 0 }
   0x2   :  { %12 = vsyncpa [#allocation4], 0  ;;  %s695_s18 = smov [#allocation5]   ;;  %s696_s20 = smov [#allocation2]  }
   0x3   :  { %s32_s19 = sshll.u32 %s695_s18, 4  ;;  %s20_s21 = sshll.u32 %s696_s20, 4  ;;  %s33_s19 = int_to_ptr.vmem [resolvable:$true] %s32_s19  ;;  %s734_s21 = int_to_ptr.vmem [resolvable:$true] %s20_s21 }
   0x4   :  { %s601_s24 = scalar_lea.hbm %s842_s2, 2048 }
   0x5   :  { %p602_p0 = scmp.ne.s32.totalorder %s842_s2, %s601_s24  ;;  %p605_p1 = scmp.lt.u32.totalorder %s601_s24, %s842_s2 }
   0x7   :  { %p607_p2 = pnand %p605_p1, %p602_p0 }
   0x9   :  { %610 = shalt.err (!%p607_p2)
}
   0xa   :  { %s611_s29 = scalar_lea.vmem %s33_s19, 2048  ;;  %p616_p4 = scmp.lt.s32.totalorder %s33_s19, %s33_s19 }
   0xb   :  { %p612_p3 = scmp.ne.s32.totalorder %s33_s19, %s611_s29  ;;  %p617_p5 = scmp.lt.s32.totalorder %s611_s29, %s611_s29 }
   0xd   :  { %p618_p6 = por %p617_p5, %p616_p4 }
   0xf   :  { %p619_p7 = pnand %p618_p6, %p612_p3 }
  0x11   :  { %622 = shalt.err (!%p619_p7)
}
  0x12   :  { %s697_s30 = smov 128   ;;  %s698_s6 = smov 8  }
  0x13   :  { %38 = dma.hbm_to_vmem [thread:$0]  %s842_s2, 2048, %s33_s19, [#allocation6], %s697_s30, %s697_s30, %s698_s6  }
  0x14   :  { %s623_s11 = scalar_lea.hbm %s841_s1, 2048 }
  0x15   :  { %p624_p8 = scmp.ne.s32.totalorder %s841_s1, %s623_s11  ;;  %p627_p9 = scmp.lt.u32.totalorder %s623_s11, %s841_s1 }
  0x17   :  { %p629_p10 = pnand %p627_p9, %p624_p8 }
  0x19   :  { %632 = shalt.err (!%p629_p10)
}
  0x1a   :  { %s633_s16 = scalar_lea.vmem %s734_s21, 2048  ;;  %p638_p12 = scmp.lt.s32.totalorder %s734_s21, %s734_s21 }
  0x1b   :  { %p634_p11 = scmp.ne.s32.totalorder %s734_s21, %s633_s16  ;;  %p639_p13 = scmp.lt.s32.totalorder %s633_s16, %s633_s16 }
  0x1d   :  { %p640_p0 = por %p639_p13, %p638_p12 }
  0x1f   :  { %p641_p1 = pnand %p640_p0, %p634_p11 }
  0x21   :  { %644 = shalt.err (!%p641_p1)
}
  0x22   :  { %26 = dma.hbm_to_vmem [thread:$0]  %s841_s1, 2048, %s734_s21, [#allocation3], %s697_s30, %s697_s30, %s698_s6  }
  0x23   :  { %s699_s18 = smov [#allocation7]   ;;  %s645_s23 = scalar_lea.hbm %s843_s3, 2048 }
  0x24   :  { %s44_s19 = sshll.u32 %s699_s18, 4  ;;  %p646_p2 = scmp.ne.s32.totalorder %s843_s3, %s645_s23  ;;  %s45_s19 = int_to_ptr.vmem [resolvable:$true] %s44_s19 }
  0x25   :  { %p649_p3 = scmp.lt.u32.totalorder %s645_s23, %s843_s3 }
  0x27   :  { %p651_p4 = pnand %p649_p3, %p646_p2 }
  0x29   :  { %654 = shalt.err (!%p651_p4)
}
  0x2a   :  { %s655_s28 = scalar_lea.vmem %s45_s19, 2048  ;;  %p660_p6 = scmp.lt.s32.totalorder %s45_s19, %s45_s19 }
  0x2b   :  { %p656_p5 = scmp.ne.s32.totalorder %s45_s19, %s655_s28  ;;  %p661_p7 = scmp.lt.s32.totalorder %s655_s28, %s655_s28 }
  0x2d   :  { %p662_p8 = por %p661_p7, %p660_p6 }
  0x2f   :  { %p663_p9 = pnand %p662_p8, %p656_p5 }
  0x31   :  { %666 = shalt.err (!%p663_p9)
}
  0x32   :  { %50 = dma.hbm_to_vmem [thread:$0]  %s843_s3, 2048, %s45_s19, [#allocation6], %s697_s30, %s697_s30, %s698_s6  }
  0x33   :  { %689 = dma.done.wait [#allocation3], 2048  }
  0x34   :  { %690 = vsyncadd [#allocation3], 4294965248 }
  0x35   :  { %691 = dma.done.wait [#allocation6], 4096  }
  0x36   :  { %692 = vsyncadd [#allocation6], 4294963200  ;;  %v700_v0 = vmov 0.0|0.0   ;;  %vm701_vm0 = vmmov 0   ;;  %v702_v1 = vmov 0.0   ;;  %v63_v2 = vld [vmem:[#allocation2] sm:$0xff] }
  0x37   :  { %520 = vmatprep.subr.bf16.mxu0 %v700_v0  ;;  %447 = vmatprep.mubr.msk.f32.mxu0 %vm701_vm0, %v702_v1  ;;  %v64_v3 = vld [vmem:[#allocation2 + $0x8] sm:$0xff]  ;;  %v65_v4 = vld [vmem:[#allocation2 + $0x10] sm:$0xff]  ;;  %v66_v6 = vld [vmem:[#allocation2 + $0x18] sm:$0xff]  ;;  %s703_s10 = smov [#allocation8]  }
  0x38   :  { %544 = vmatprep.subr.bf16.mxu1 %v700_v0  ;;  %482 = vmatprep.mubr.msk.f32.mxu1 %vm701_vm0, %v702_v1  ;;  %v521_v5 = vpack.c.bf16 %v64_v3, %v63_v2  ;;  %v524_v7 = vpack.c.bf16 %v66_v6, %v65_v4  ;;  %v67_v8 = vld [vmem:[#allocation2 + $0x20] sm:$0xff]  ;;  %v68_v9 = vld [vmem:[#allocation2 + $0x28] sm:$0xff]  ;;  %v159_v12 = vld [vmem:[#allocation5 + $0x10] sm:$0xff]  ;;  %s351_s11 = sshll.u32 %s703_s10, 4  ;;  %s352_s11 = int_to_ptr.vmem [resolvable:$true] %s351_s11 }
  0x39   :  { %v157_v10 = vld [vmem:[#allocation5] sm:$0xff]  ;;  %v158_v11 = vld [vmem:[#allocation5 + $0x8] sm:$0xff]  ;;  %v160_v13 = vld [vmem:[#allocation5 + $0x18] sm:$0xff]  ;;  %v527_v14 = vpack.c.bf16 %v68_v9, %v67_v8  ;;  %s667_s12 = scalar_lea.vmem %s352_s11, 128  ;;  %p672_p11 = scmp.lt.s32.totalorder %s352_s11, %s352_s11 }
  0x3a   :  { %522 = vmatpush3.bf16.msra.mxu0 %v521_v5  ;;  %v545_v15 = vpack.c.bf16 %v158_v11, %v157_v10  ;;  %v69_v16 = vld [vmem:[#allocation2 + $0x30] sm:$0xff]  ;;  %v70_v17 = vld [vmem:[#allocation2 + $0x38] sm:$0xff]  ;;  %v548_v18 = vpack.c.bf16 %v160_v13, %v159_v12  ;;  %v161_v19 = vld [vmem:[#allocation5 + $0x20] sm:$0xff]  ;;  %p668_p10 = scmp.ne.s32.totalorder %s352_s11, %s667_s12  ;;  %p673_p12 = scmp.lt.s32.totalorder %s667_s12, %s667_s12 }
  0x3b   :  { %523 = vmatprep.subr.bf16.mxu0 %v700_v0  ;;  %v162_v20 = vld [vmem:[#allocation5 + $0x28] sm:$0xff]  ;;  %v530_v21 = vpack.c.bf16 %v70_v17, %v69_v16  ;;  %v71_v22 = vld [vmem:[#allocation2 + $0x40] sm:$0xff]  ;;  %v163_v25 = vld [vmem:[#allocation5 + $0x30] sm:$0xff] }
  0x3c   :  { %546 = vmatpush3.bf16.msra.mxu1 %v545_v15  ;;  %v72_v23 = vld [vmem:[#allocation2 + $0x48] sm:$0xff]  ;;  %v551_v24 = vpack.c.bf16 %v162_v20, %v161_v19  ;;  %v164_v26 = vld [vmem:[#allocation5 + $0x38] sm:$0xff]  ;;  %v73_v28 = vld [vmem:[#allocation2 + $0x50] sm:$0xff]  ;;  %p674_p13 = por %p673_p12, %p672_p11 }
  0x3d   :  { %547 = vmatprep.subr.bf16.mxu1 %v700_v0  ;;  %v533_v27 = vpack.c.bf16 %v72_v23, %v71_v22  ;;  %v74_v29 = vld [vmem:[#allocation2 + $0x58] sm:$0xff]  ;;  %v554_v30 = vpack.c.bf16 %v164_v26, %v163_v25  ;;  %v165_v31 = vld [vmem:[#allocation5 + $0x40] sm:$0xff]  ;;  %v166_v32 = vld [vmem:[#allocation5 + $0x48] sm:$0xff] }
  0x3e   :  { %525 = vmatpush3.bf16.msra.mxu0 %v524_v7  ;;  %v536_v33 = vpack.c.bf16 %v74_v29, %v73_v28  ;;  %v75_v34 = vld [vmem:[#allocation2 + $0x60] sm:$0xff]  ;;  %v76_v35 = vld [vmem:[#allocation2 + $0x68] sm:$0xff]  ;;  %v557_v36 = vpack.c.bf16 %v166_v32, %v165_v31  ;;  %v167_v37 = vld [vmem:[#allocation5 + $0x50] sm:$0xff]  ;;  %p675_p0 = pnand %p674_p13, %p668_p10 }
  0x3f   :  { %526 = vmatprep.subr.bf16.mxu0 %v700_v0  ;;  %v168_v38 = vld [vmem:[#allocation5 + $0x58] sm:$0xff]  ;;  %v539_v39 = vpack.c.bf16 %v76_v35, %v75_v34  ;;  %v77_v40 = vld [vmem:[#allocation2 + $0x70] sm:$0xff]  ;;  %v169_v43 = vld [vmem:[#allocation5 + $0x60] sm:$0xff] }
  0x40   :  { %549 = vmatpush3.bf16.msra.mxu1 %v548_v18  ;;  %v78_v41 = vld [vmem:[#allocation2 + $0x78] sm:$0xff]  ;;  %v560_v42 = vpack.c.bf16 %v168_v38, %v167_v37  ;;  %v170_v44 = vld [vmem:[#allocation5 + $0x68] sm:$0xff]  ;;  %v62_v47 = vld [vmem:[%s840_s0] sm:$0xff] }
  0x41   :  { %550 = vmatprep.subr.bf16.mxu1 %v700_v0  ;;  %v542_v45 = vpack.c.bf16 %v78_v41, %v77_v40  ;;  %v563_v46 = vpack.c.bf16 %v170_v44, %v169_v43  ;;  %v171_v48 = vld [vmem:[#allocation5 + $0x70] sm:$0xff]  ;;  %v172_v49 = vld [vmem:[#allocation5 + $0x78] sm:$0xff]  ;;  %v251_v51 = vld [vmem:[#allocation7] sm:$0xff] }
  0x42   :  { %528 = vmatpush3.bf16.msra.mxu0 %v527_v14  ;;  %v566_v50 = vpack.c.bf16 %v172_v49, %v171_v48  ;;  %v252_v52 = vld [vmem:[#allocation7 + $0x8] sm:$0xff]  ;;  %v253_v53 = vld [vmem:[#allocation7 + $0x10] sm:$0xff]  ;;  %v254_v55 = vld [vmem:[#allocation7 + $0x18] sm:$0xff] }
  0x43   :  { %529 = vmatprep.subr.bf16.mxu0 %v700_v0  ;;  %v569_v54 = vpack.c.bf16 %v252_v52, %v251_v51  ;;  %v572_v56 = vpack.c.bf16 %v254_v55, %v253_v53  ;;  %v255_v57 = vld [vmem:[#allocation7 + $0x20] sm:$0xff]  ;;  %v256_v58 = vld [vmem:[#allocation7 + $0x28] sm:$0xff]  ;;  %v257_v60 = vld [vmem:[#allocation7 + $0x30] sm:$0xff] }
  0x44   :  { %552 = vmatpush3.bf16.msra.mxu1 %v551_v24  ;;  %v575_v59 = vpack.c.bf16 %v256_v58, %v255_v57  ;;  %v258_v61 = vld [vmem:[#allocation7 + $0x38] sm:$0xff]  ;;  %v259_v63 = vld [vmem:[#allocation7 + $0x40] sm:$0xff]  ;;  %v261_v3 = vld [vmem:[#allocation7 + $0x50] sm:$0xff] }
  0x45   :  { %553 = vmatprep.subr.bf16.mxu1 %v700_v0  ;;  %v578_v62 = vpack.c.bf16 %v258_v61, %v257_v60  ;;  %v262_v4 = vld [vmem:[#allocation7 + $0x58] sm:$0xff]  ;;  %v263_v6 = vld [vmem:[#allocation7 + $0x60] sm:$0xff]  ;;  %v264_v7 = vld [vmem:[#allocation7 + $0x68] sm:$0xff] }
  0x46   :  { %531 = vmatpush3.bf16.msra.mxu0 %v530_v21  ;;  %v584_v5 = vpack.c.bf16 %v262_v4, %v261_v3  ;;  %v587_v8 = vpack.c.bf16 %v264_v7, %v263_v6  ;;  %v361_v9 = vld [vmem:[%s844_s4] ss:$0 sm:$0xff]  ;;  %v265_v14 = vld [vmem:[#allocation7 + $0x70] sm:$0xff]  ;;  %v266_v15 = vld [vmem:[#allocation7 + $0x78] sm:$0xff] }
  0x47   :  { %532 = vmatprep.subr.bf16.mxu0 %v700_v0  ;;  %v590_v16 = vpack.c.bf16 %v266_v15, %v265_v14  ;;  %v362_v17 = vld [vmem:[%s844_s4 + $0x1] ss:$0 sm:$0xff]  ;;  %v363_v21 = vld [vmem:[%s844_s4 + $0x2] ss:$0 sm:$0xff] }
  0x48   :  { %555 = vmatpush3.bf16.msra.mxu1 %v554_v30 }
  0x49   :  { %556 = vmatprep.subr.bf16.mxu1 %v700_v0 }
  0x4a   :  { %534 = vmatpush3.bf16.msra.mxu0 %v533_v27 }
  0x4b   :  { %535 = vmatprep.subr.bf16.mxu0 %v700_v0 }
  0x4c   :  { %558 = vmatpush3.bf16.msra.mxu1 %v557_v36 }
  0x4d   :  { %559 = vmatprep.subr.bf16.mxu1 %v700_v0 }
  0x4e   :  { %537 = vmatpush3.bf16.msra.mxu0 %v536_v33 }
  0x4f   :  { %538 = vmatprep.subr.bf16.mxu0 %v700_v0 }
  0x50   :  { %561 = vmatpush3.bf16.msra.mxu1 %v560_v42 }
  0x51   :  { %562 = vmatprep.subr.bf16.mxu1 %v700_v0 }
  0x52   :  { %540 = vmatpush3.bf16.msra.mxu0 %v539_v39 }
  0x53   :  { %541 = vmatprep.subr.bf16.mxu0 %v700_v0 }
  0x54   :  { %564 = vmatpush3.bf16.msra.mxu1 %v563_v46 }
  0x55   :  { %565 = vmatprep.subr.bf16.mxu1 %v700_v0 }
  0x56   :  { %543 = vmatpush3.bf16.msra.mxu0 %v542_v45 }
  0x57   :  { %568 = vmatprep.subr.bf16.mxu0 %v700_v0 }
  0x58   :  { %567 = vmatpush3.bf16.msra.mxu1 %v566_v50 }
  0x59   :  { %448 = vmatmul.mubr.f32.vlgmr.msra.gmra.mrb[0].mxu0 %v62_v47 }
  0x5a   :  { %517 = vmatprep.mubr.msk.f32.mxu0 %vm701_vm0, %v702_v1  ;;  %570 = vmatpush3.bf16.msra.mxu0 %v569_v54  ;;  %v260_v1 = vld [vmem:[#allocation7 + $0x48] sm:$0xff] }
  0x5b   :  { %571 = vmatprep.subr.bf16.mxu0 %v700_v0  ;;  %v581_v2 = vpack.c.bf16 %v260_v1, %v259_v63 }
  0x5e   :  { %573 = vmatpush3.bf16.msra.mxu0 %v572_v56 }
  0x5f   :  { %574 = vmatprep.subr.bf16.mxu0 %v700_v0 }
  0x62   :  { %576 = vmatpush3.bf16.msra.mxu0 %v575_v59 }
  0x63   :  { %577 = vmatprep.subr.bf16.mxu0 %v700_v0 }
  0x66   :  { %579 = vmatpush3.bf16.msra.mxu0 %v578_v62 }
  0x67   :  { %580 = vmatprep.subr.bf16.mxu0 %v700_v0 }
  0x6a   :  { %582 = vmatpush3.bf16.msra.mxu0 %v581_v2 }
  0x6b   :  { %583 = vmatprep.subr.bf16.mxu0 %v700_v0 }
  0x6e   :  { %585 = vmatpush3.bf16.msra.mxu0 %v584_v5 }
  0x6f   :  { %586 = vmatprep.subr.bf16.mxu0 %v700_v0 }
  0x72   :  { %588 = vmatpush3.bf16.msra.mxu0 %v587_v8 }
  0x73   :  { %589 = vmatprep.subr.bf16.mxu0 %v700_v0 }
  0x76   :  { %591 = vmatpush3.bf16.msra.mxu0 %v590_v16 }
 0x12c   :  { %v152_v10 = vpop.f32.mrb[0].mxu0 }
 0x12d   :  { %v153_v11 = vadd.f32 %v361_v9, %v152_v10  ;;  %v449_v12 = vpop.f32.mrb[1].mxu0 }
 0x12f   :  { %v156_v13 = vmax.f32 %v153_v11, 0.0 }
 0x131   :  { %483 = vmatmul.mubr.f32.vlgmr.msra.gmra.mrb[0].mxu1 %v156_v13 }
 0x204   :  { %v246_v18 = vpop.f32.mrb[0].mxu1 }
 0x205   :  { %v247_v19 = vadd.f32 %v362_v17, %v246_v18  ;;  %v484_v0 = vpop.f32.mrb[1].mxu1 }
 0x207   :  { %v250_v20 = vmax.f32 %v247_v19, 0.0 }
 0x209   :  { %518 = vmatmul.mubr.f32.vlgmr.msra.gmra.mrb[2].mxu0 %v250_v20 }
 0x2dc   :  { %v340_v22 = vpop.f32.mrb[2].mxu0 }
 0x2dd   :  { %v341_v23 = vadd.f32 %v363_v21, %v340_v22  ;;  %v519_v24 = vpop.f32.mrb[3].mxu0 }
 0x2df   :  { %344 = vst [vmem:[#allocation8] sm:$0xff] %v341_v23 }
 0x2e0   :  { %678 = shalt.err (!%p675_p0)
}
 0x2e1   :  { %s679_s15 = scalar_lea.hbm %s845_s5, 128 }
 0x2e2   :  { %p680_p1 = scmp.ne.s32.totalorder %s845_s5, %s679_s15  ;;  %p683_p2 = scmp.lt.u32.totalorder %s679_s15, %s845_s5 }
 0x2e4   :  { %p685_p3 = pnand %p683_p2, %p680_p1 }
 0x2e6   :  { %688 = shalt.err (!%p685_p3)
}
 0x2e7   :  { %354 = dma.vmem_to_hbm [thread:$0]  %s352_s11, 128, %s845_s5, [#allocation4]  }
 0x2e8   :  { %693 = dma.done.wait [#allocation4], 128  }
 0x2e9   :  { %694 = vsyncadd [#allocation4], 4294967168 }
 0x2ea   :  { %358 = vsyncpa [#allocation3], 1 }
 0x2eb   :  { %359 = vsyncpa [#allocation6], 1 }
 0x2ec   :  { %360 = vsyncpa [#allocation4], 1 }

// kernel: forward.1
= control target key start
LH: loop header
LB: loop body
LE: loop exit
PB: predicated region body
PF: predicated region fallthrough
CT: control target
= control target key end

     0   :  { %10 = vsyncpa [#allocation3], 0  ;;  %s840_s0 = inlined_call_operand.vmem [shape: f32[8,128], index: 0, kind: input, shape index: {}]   ;;  %s841_s1 = inlined_call_operand.hbm [shape: f32[128,128], index: 1, kind: input, shape index: {}]   ;;  %s842_s2 = inlined_call_operand.hbm [shape: f32[128,128], index: 2, kind: input, shape index: {}]   ;;  %s843_s3 = inlined_call_operand.hbm [shape: f32[128,128], index: 3, kind: input, shape index: {}]   ;;  %s844_s4 = inlined_call_operand.vmem [shape: f32[1,384], index: 4, kind: input, shape index: {}]   ;;  %s845_s5 = inlined_call_operand.hbm [shape: f32[8,128], index: 5, kind: output, shape index: {}]  }
   0x1   :  { %11 = vsyncpa [#allocation6], 0 }
   0x2   :  { %12 = vsyncpa [#allocation4], 0  ;;  %s695_s18 = smov [#allocation5]   ;;  %s696_s20 = smov [#allocation2]  }
   0x3   :  { %s32_s19 = sshll.u32 %s695_s18, 4  ;;  %s20_s21 = sshll.u32 %s696_s20, 4  ;;  %s33_s19 = int_to_ptr.vmem [resolvable:$true] %s32_s19  ;;  %s734_s21 = int_to_ptr.vmem [resolvable:$true] %s20_s21 }
   0x4   :  { %s601_s24 = scalar_lea.hbm %s842_s2, 2048 }
   0x5   :  { %p602_p0 = scmp.ne.s32.totalorder %s842_s2, %s601_s24  ;;  %p605_p1 = scmp.lt.u32.totalorder %s601_s24, %s842_s2 }
   0x7   :  { %p607_p2 = pnand %p605_p1, %p602_p0 }
   0x9   :  { %610 = shalt.err (!%p607_p2)
}
   0xa   :  { %s611_s29 = scalar_lea.vmem %s33_s19, 2048  ;;  %p616_p4 = scmp.lt.s32.totalorder %s33_s19, %s33_s19 }
   0xb   :  { %p612_p3 = scmp.ne.s32.totalorder %s33_s19, %s611_s29  ;;  %p617_p5 = scmp.lt.s32.totalorder %s611_s29, %s611_s29 }
   0xd   :  { %p618_p6 = por %p617_p5, %p616_p4 }
   0xf   :  { %p619_p7 = pnand %p618_p6, %p612_p3 }
  0x11   :  { %622 = shalt.err (!%p619_p7)
}
  0x12   :  { %s697_s30 = smov 128   ;;  %s698_s6 = smov 8  }
  0x13   :  { %38 = dma.hbm_to_vmem [thread:$0]  %s842_s2, 2048, %s33_s19, [#allocation6], %s697_s30, %s697_s30, %s698_s6  }
  0x14   :  { %s623_s11 = scalar_lea.hbm %s841_s1, 2048 }
  0x15   :  { %p624_p8 = scmp.ne.s32.totalorder %s841_s1, %s623_s11  ;;  %p627_p9 = scmp.lt.u32.totalorder %s623_s11, %s841_s1 }
  0x17   :  { %p629_p10 = pnand %p627_p9, %p624_p8 }
  0x19   :  { %632 = shalt.err (!%p629_p10)
}
  0x1a   :  { %s633_s16 = scalar_lea.vmem %s734_s21, 2048  ;;  %p638_p12 = scmp.lt.s32.totalorder %s734_s21, %s734_s21 }
  0x1b   :  { %p634_p11 = scmp.ne.s32.totalorder %s734_s21, %s633_s16  ;;  %p639_p13 = scmp.lt.s32.totalorder %s633_s16, %s633_s16 }
  0x1d   :  { %p640_p0 = por %p639_p13, %p638_p12 }
  0x1f   :  { %p641_p1 = pnand %p640_p0, %p634_p11 }
  0x21   :  { %644 = shalt.err (!%p641_p1)
}
  0x22   :  { %26 = dma.hbm_to_vmem [thread:$0]  %s841_s1, 2048, %s734_s21, [#allocation3], %s697_s30, %s697_s30, %s698_s6  }
  0x23   :  { %s699_s18 = smov [#allocation7]   ;;  %s645_s23 = scalar_lea.hbm %s843_s3, 2048 }
  0x24   :  { %s44_s19 = sshll.u32 %s699_s18, 4  ;;  %p646_p2 = scmp.ne.s32.totalorder %s843_s3, %s645_s23  ;;  %s45_s19 = int_to_ptr.vmem [resolvable:$true] %s44_s19 }
  0x25   :  { %p649_p3 = scmp.lt.u32.totalorder %s645_s23, %s843_s3 }
  0x27   :  { %p651_p4 = pnand %p649_p3, %p646_p2 }
  0x29   :  { %654 = shalt.err (!%p651_p4)
}
  0x2a   :  { %s655_s28 = scalar_lea.vmem %s45_s19, 2048  ;;  %p660_p6 = scmp.lt.s32.totalorder %s45_s19, %s45_s19 }
  0x2b   :  { %p656_p5 = scmp.ne.s32.totalorder %s45_s19, %s655_s28  ;;  %p661_p7 = scmp.lt.s32.totalorder %s655_s28, %s655_s28 }
  0x2d   :  { %p662_p8 = por %p661_p7, %p660_p6 }
  0x2f   :  { %p663_p9 = pnand %p662_p8, %p656_p5 }
  0x31   :  { %666 = shalt.err (!%p663_p9)
}
  0x32   :  { %50 = dma.hbm_to_vmem [thread:$0]  %s843_s3, 2048, %s45_s19, [#allocation6], %s697_s30, %s697_s30, %s698_s6  }
  0x33   :  { %689 = dma.done.wait [#allocation3], 2048  }
  0x34   :  { %690 = vsyncadd [#allocation3], 4294965248 }
  0x35   :  { %691 = dma.done.wait [#allocation6], 4096  }
  0x36   :  { %692 = vsyncadd [#allocation6], 4294963200  ;;  %v700_v0 = vmov 0.0|0.0   ;;  %vm701_vm0 = vmmov 0   ;;  %v702_v1 = vmov 0.0   ;;  %v63_v2 = vld [vmem:[#allocation2] sm:$0xff] }
  0x37   :  { %520 = vmatprep.subr.bf16.mxu0 %v700_v0  ;;  %447 = vmatprep.mubr.msk.f32.mxu0 %vm701_vm0, %v702_v1  ;;  %v64_v3 = vld [vmem:[#allocation2 + $0x8] sm:$0xff]  ;;  %v65_v4 = vld [vmem:[#allocation2 + $0x10] sm:$0xff]  ;;  %v66_v6 = vld [vmem:[#allocation2 + $0x18] sm:$0xff]  ;;  %s703_s10 = smov [#allocation8]  }
  0x38   :  { %544 = vmatprep.subr.bf16.mxu1 %v700_v0  ;;  %482 = vmatprep.mubr.msk.f32.mxu1 %vm701_vm0, %v702_v1  ;;  %v521_v5 = vpack.c.bf16 %v64_v3, %v63_v2  ;;  %v524_v7 = vpack.c.bf16 %v66_v6, %v65_v4  ;;  %v67_v8 = vld [vmem:[#allocation2 + $0x20] sm:$0xff]  ;;  %v68_v9 = vld [vmem:[#allocation2 + $0x28] sm:$0xff]  ;;  %v159_v12 = vld [vmem:[#allocation5 + $0x10] sm:$0xff]  ;;  %s351_s11 = sshll.u32 %s703_s10, 4  ;;  %s352_s11 = int_to_ptr.vmem [resolvable:$true] %s351_s11 }
  0x39   :  { %v157_v10 = vld [vmem:[#allocation5] sm:$0xff]  ;;  %v158_v11 = vld [vmem:[#allocation5 + $0x8] sm:$0xff]  ;;  %v160_v13 = vld [vmem:[#allocation5 + $0x18] sm:$0xff]  ;;  %v527_v14 = vpack.c.bf16 %v68_v9, %v67_v8  ;;  %s667_s12 = scalar_lea.vmem %s352_s11, 128  ;;  %p672_p11 = scmp.lt.s32.totalorder %s352_s11, %s352_s11 }
  0x3a   :  { %522 = vmatpush3.bf16.msra.mxu0 %v521_v5  ;;  %v545_v15 = vpack.c.bf16 %v158_v11, %v157_v10  ;;  %v69_v16 = vld [vmem:[#allocation2 + $0x30] sm:$0xff]  ;;  %v70_v17 = vld [vmem:[#allocation2 + $0x38] sm:$0xff]  ;;  %v548_v18 = vpack.c.bf16 %v160_v13, %v159_v12  ;;  %v161_v19 = vld [vmem:[#allocation5 + $0x20] sm:$0xff]  ;;  %p668_p10 = scmp.ne.s32.totalorder %s352_s11, %s667_s12  ;;  %p673_p12 = scmp.lt.s32.totalorder %s667_s12, %s667_s12 }
  0x3b   :  { %523 = vmatprep.subr.bf16.mxu0 %v700_v0  ;;  %v162_v20 = vld [vmem:[#allocation5 + $0x28] sm:$0xff]  ;;  %v530_v21 = vpack.c.bf16 %v70_v17, %v69_v16  ;;  %v71_v22 = vld [vmem:[#allocation2 + $0x40] sm:$0xff]  ;;  %v163_v25 = vld [vmem:[#allocation5 + $0x30] sm:$0xff] }
  0x3c   :  { %546 = vmatpush3.bf16.msra.mxu1 %v545_v15  ;;  %v72_v23 = vld [vmem:[#allocation2 + $0x48] sm:$0xff]  ;;  %v551_v24 = vpack.c.bf16 %v162_v20, %v161_v19  ;;  %v164_v26 = vld [vmem:[#allocation5 + $0x38] sm:$0xff]  ;;  %v73_v28 = vld [vmem:[#allocation2 + $0x50] sm:$0xff]  ;;  %p674_p13 = por %p673_p12, %p672_p11 }
  0x3d   :  { %547 = vmatprep.subr.bf16.mxu1 %v700_v0  ;;  %v533_v27 = vpack.c.bf16 %v72_v23, %v71_v22  ;;  %v74_v29 = vld [vmem:[#allocation2 + $0x58] sm:$0xff]  ;;  %v554_v30 = vpack.c.bf16 %v164_v26, %v163_v25  ;;  %v165_v31 = vld [vmem:[#allocation5 + $0x40] sm:$0xff]  ;;  %v166_v32 = vld [vmem:[#allocation5 + $0x48] sm:$0xff] }
  0x3e   :  { %525 = vmatpush3.bf16.msra.mxu0 %v524_v7  ;;  %v536_v33 = vpack.c.bf16 %v74_v29, %v73_v28  ;;  %v75_v34 = vld [vmem:[#allocation2 + $0x60] sm:$0xff]  ;;  %v76_v35 = vld [vmem:[#allocation2 + $0x68] sm:$0xff]  ;;  %v557_v36 = vpack.c.bf16 %v166_v32, %v165_v31  ;;  %v167_v37 = vld [vmem:[#allocation5 + $0x50] sm:$0xff]  ;;  %p675_p0 = pnand %p674_p13, %p668_p10 }
  0x3f   :  { %526 = vmatprep.subr.bf16.mxu0 %v700_v0  ;;  %v168_v38 = vld [vmem:[#allocation5 + $0x58] sm:$0xff]  ;;  %v539_v39 = vpack.c.bf16 %v76_v35, %v75_v34  ;;  %v77_v40 = vld [vmem:[#allocation2 + $0x70] sm:$0xff]  ;;  %v169_v43 = vld [vmem:[#allocation5 + $0x60] sm:$0xff] }
  0x40   :  { %549 = vmatpush3.bf16.msra.mxu1 %v548_v18  ;;  %v78_v41 = vld [vmem:[#allocation2 + $0x78] sm:$0xff]  ;;  %v560_v42 = vpack.c.bf16 %v168_v38, %v167_v37  ;;  %v170_v44 = vld [vmem:[#allocation5 + $0x68] sm:$0xff]  ;;  %v62_v47 = vld [vmem:[%s840_s0] sm:$0xff] }
  0x41   :  { %550 = vmatprep.subr.bf16.mxu1 %v700_v0  ;;  %v542_v45 = vpack.c.bf16 %v78_v41, %v77_v40  ;;  %v563_v46 = vpack.c.bf16 %v170_v44, %v169_v43  ;;  %v171_v48 = vld [vmem:[#allocation5 + $0x70] sm:$0xff]  ;;  %v172_v49 = vld [vmem:[#allocation5 + $0x78] sm:$0xff]  ;;  %v251_v51 = vld [vmem:[#allocation7] sm:$0xff] }
  0x42   :  { %528 = vmatpush3.bf16.msra.mxu0 %v527_v14  ;;  %v566_v50 = vpack.c.bf16 %v172_v49, %v171_v48  ;;  %v252_v52 = vld [vmem:[#allocation7 + $0x8] sm:$0xff]  ;;  %v253_v53 = vld [vmem:[#allocation7 + $0x10] sm:$0xff]  ;;  %v254_v55 = vld [vmem:[#allocation7 + $0x18] sm:$0xff] }
  0x43   :  { %529 = vmatprep.subr.bf16.mxu0 %v700_v0  ;;  %v569_v54 = vpack.c.bf16 %v252_v52, %v251_v51  ;;  %v572_v56 = vpack.c.bf16 %v254_v55, %v253_v53  ;;  %v255_v57 = vld [vmem:[#allocation7 + $0x20] sm:$0xff]  ;;  %v256_v58 = vld [vmem:[#allocation7 + $0x28] sm:$0xff]  ;;  %v257_v60 = vld [vmem:[#allocation7 + $0x30] sm:$0xff] }
  0x44   :  { %552 = vmatpush3.bf16.msra.mxu1 %v551_v24  ;;  %v575_v59 = vpack.c.bf16 %v256_v58, %v255_v57  ;;  %v258_v61 = vld [vmem:[#allocation7 + $0x38] sm:$0xff]  ;;  %v259_v63 = vld [vmem:[#allocation7 + $0x40] sm:$0xff]  ;;  %v261_v3 = vld [vmem:[#allocation7 + $0x50] sm:$0xff] }
  0x45   :  { %553 = vmatprep.subr.bf16.mxu1 %v700_v0  ;;  %v578_v62 = vpack.c.bf16 %v258_v61, %v257_v60  ;;  %v262_v4 = vld [vmem:[#allocation7 + $0x58] sm:$0xff]  ;;  %v263_v6 = vld [vmem:[#allocation7 + $0x60] sm:$0xff]  ;;  %v264_v7 = vld [vmem:[#allocation7 + $0x68] sm:$0xff] }
  0x46   :  { %531 = vmatpush3.bf16.msra.mxu0 %v530_v21  ;;  %v584_v5 = vpack.c.bf16 %v262_v4, %v261_v3  ;;  %v587_v8 = vpack.c.bf16 %v264_v7, %v263_v6  ;;  %v361_v9 = vld [vmem:[%s844_s4] ss:$0 sm:$0xff]  ;;  %v265_v14 = vld [vmem:[#allocation7 + $0x70] sm:$0xff]  ;;  %v266_v15 = vld [vmem:[#allocation7 + $0x78] sm:$0xff] }
  0x47   :  { %532 = vmatprep.subr.bf16.mxu0 %v700_v0  ;;  %v590_v16 = vpack.c.bf16 %v266_v15, %v265_v14  ;;  %v362_v17 = vld [vmem:[%s844_s4 + $0x1] ss:$0 sm:$0xff]  ;;  %v363_v21 = vld [vmem:[%s844_s4 + $0x2] ss:$0 sm:$0xff] }
  0x48   :  { %555 = vmatpush3.bf16.msra.mxu1 %v554_v30 }
  0x49   :  { %556 = vmatprep.subr.bf16.mxu1 %v700_v0 }
  0x4a   :  { %534 = vmatpush3.bf16.msra.mxu0 %v533_v27 }
  0x4b   :  { %535 = vmatprep.subr.bf16.mxu0 %v700_v0 }
  0x4c   :  { %558 = vmatpush3.bf16.msra.mxu1 %v557_v36 }
  0x4d   :  { %559 = vmatprep.subr.bf16.mxu1 %v700_v0 }
  0x4e   :  { %537 = vmatpush3.bf16.msra.mxu0 %v536_v33 }
  0x4f   :  { %538 = vmatprep.subr.bf16.mxu0 %v700_v0 }
  0x50   :  { %561 = vmatpush3.bf16.msra.mxu1 %v560_v42 }
  0x51   :  { %562 = vmatprep.subr.bf16.mxu1 %v700_v0 }
  0x52   :  { %540 = vmatpush3.bf16.msra.mxu0 %v539_v39 }
  0x53   :  { %541 = vmatprep.subr.bf16.mxu0 %v700_v0 }
  0x54   :  { %564 = vmatpush3.bf16.msra.mxu1 %v563_v46 }
  0x55   :  { %565 = vmatprep.subr.bf16.mxu1 %v700_v0 }
  0x56   :  { %543 = vmatpush3.bf16.msra.mxu0 %v542_v45 }
  0x57   :  { %568 = vmatprep.subr.bf16.mxu0 %v700_v0 }
  0x58   :  { %567 = vmatpush3.bf16.msra.mxu1 %v566_v50 }
  0x59   :  { %448 = vmatmul.mubr.f32.vlgmr.msra.gmra.mrb[0].mxu0 %v62_v47 }
  0x5a   :  { %517 = vmatprep.mubr.msk.f32.mxu0 %vm701_vm0, %v702_v1  ;;  %570 = vmatpush3.bf16.msra.mxu0 %v569_v54  ;;  %v260_v1 = vld [vmem:[#allocation7 + $0x48] sm:$0xff] }
  0x5b   :  { %571 = vmatprep.subr.bf16.mxu0 %v700_v0  ;;  %v581_v2 = vpack.c.bf16 %v260_v1, %v259_v63 }
  0x5e   :  { %573 = vmatpush3.bf16.msra.mxu0 %v572_v56 }
  0x5f   :  { %574 = vmatprep.subr.bf16.mxu0 %v700_v0 }
  0x62   :  { %576 = vmatpush3.bf16.msra.mxu0 %v575_v59 }
  0x63   :  { %577 = vmatprep.subr.bf16.mxu0 %v700_v0 }
  0x66   :  { %579 = vmatpush3.bf16.msra.mxu0 %v578_v62 }
  0x67   :  { %580 = vmatprep.subr.bf16.mxu0 %v700_v0 }
  0x6a   :  { %582 = vmatpush3.bf16.msra.mxu0 %v581_v2 }
  0x6b   :  { %583 = vmatprep.subr.bf16.mxu0 %v700_v0 }
  0x6e   :  { %585 = vmatpush3.bf16.msra.mxu0 %v584_v5 }
  0x6f   :  { %586 = vmatprep.subr.bf16.mxu0 %v700_v0 }
  0x72   :  { %588 = vmatpush3.bf16.msra.mxu0 %v587_v8 }
  0x73   :  { %589 = vmatprep.subr.bf16.mxu0 %v700_v0 }
  0x76   :  { %591 = vmatpush3.bf16.msra.mxu0 %v590_v16 }
 0x12c   :  { %v152_v10 = vpop.f32.mrb[0].mxu0 }
 0x12d   :  { %v153_v11 = vadd.f32 %v361_v9, %v152_v10  ;;  %v449_v12 = vpop.f32.mrb[1].mxu0 }
 0x12f   :  { %v156_v13 = vmax.f32 %v153_v11, 0.0 }
 0x131   :  { %483 = vmatmul.mubr.f32.vlgmr.msra.gmra.mrb[0].mxu1 %v156_v13 }
 0x204   :  { %v246_v18 = vpop.f32.mrb[0].mxu1 }
 0x205   :  { %v247_v19 = vadd.f32 %v362_v17, %v246_v18  ;;  %v484_v0 = vpop.f32.mrb[1].mxu1 }
 0x207   :  { %v250_v20 = vmax.f32 %v247_v19, 0.0 }
 0x209   :  { %518 = vmatmul.mubr.f32.vlgmr.msra.gmra.mrb[2].mxu0 %v250_v20 }
 0x2dc   :  { %v340_v22 = vpop.f32.mrb[2].mxu0 }
 0x2dd   :  { %v341_v23 = vadd.f32 %v363_v21, %v340_v22  ;;  %v519_v24 = vpop.f32.mrb[3].mxu0 }
 0x2df   :  { %344 = vst [vmem:[#allocation8] sm:$0xff] %v341_v23 }
 0x2e0   :  { %678 = shalt.err (!%p675_p0)
}
 0x2e1   :  { %s679_s15 = scalar_lea.hbm %s845_s5, 128 }
 0x2e2   :  { %p680_p1 = scmp.ne.s32.totalorder %s845_s5, %s679_s15  ;;  %p683_p2 = scmp.lt.u32.totalorder %s679_s15, %s845_s5 }
 0x2e4   :  { %p685_p3 = pnand %p683_p2, %p680_p1 }
 0x2e6   :  { %688 = shalt.err (!%p685_p3)
}
 0x2e7   :  { %354 = dma.vmem_to_hbm [thread:$0]  %s352_s11, 128, %s845_s5, [#allocation4]  }
 0x2e8   :  { %693 = dma.done.wait [#allocation4], 128  }
 0x2e9   :  { %694 = vsyncadd [#allocation4], 4294967168 }
 0x2ea   :  { %358 = vsyncpa [#allocation3], 1 }
 0x2eb   :  { %359 = vsyncpa [#allocation6], 1 }
 0x2ec   :  { %360 = vsyncpa [#allocation4], 1 }

</bundles_post_ra>
